<compile_context>
chip_gen: v6e
topology: v6e:2x2x1
jax: 0.10.0
libtpu: 0.0.40
codegen_flags: <defaults>
</compile_context>

<pallas_src>
import jax
import jax.numpy as jnp
from jax.experimental import pallas as pl
from jax.experimental.pallas import tpu as pltpu


def _round_up(v, m):
    return (v + m - 1) // m * m


def rnn_cell_kernel(x_ref, h_ref, wx_ref, wh_ref, b1_ref, wm_ref, bm_ref,
                    y_ref, h_out_ref):
    # h_t = tanh(x @ Wx + h_{t-1} @ Wh + (bx + bh))
    # bf16 MXU operands, f32 accumulation; bias add + tanh in f32.
    x_b = x_ref[...].astype(wx_ref.dtype)
    h_b = h_ref[...].astype(wh_ref.dtype)
    pre = (jnp.dot(x_b, wx_ref[...], preferred_element_type=jnp.float32)
           + jnp.dot(h_b, wh_ref[...], preferred_element_type=jnp.float32)
           + b1_ref[...])
    h_t = jnp.tanh(pre)
    # NOTE: padded batch rows here equal tanh(b1) (non-zero); the wrapper slices
    # them off, so they must never be fed back as next-step state unsliced.
    h_out_ref[...] = h_t.astype(h_out_ref.dtype)
    # y_t = h_t @ Wm + bm
    y_t = (jnp.dot(h_t.astype(wm_ref.dtype), wm_ref[...],
                   preferred_element_type=jnp.float32)
           + bm_ref[...])
    y_ref[...] = y_t.astype(y_ref.dtype)


def prepare_params(params, compute_dtype=jnp.bfloat16):
    """One-time weight prep (hoisted out of the per-step call):
    pad lane dims to multiples of 128, cast matmul weights to bf16, fuse the
    two hidden-projection biases.  Weights stay (in_features, out_features)."""
    I, H = params["wx"].shape
    O = params["wm"].shape[1]
    I_pad, H_pad, O_pad = _round_up(I, 128), _round_up(H, 128), _round_up(O, 128)

    wx_p = jnp.zeros((I_pad, H_pad), compute_dtype).at[:I, :H].set(
        params["wx"].astype(compute_dtype))
    wh_p = jnp.zeros((H_pad, H_pad), compute_dtype).at[:H, :H].set(
        params["wh"].astype(compute_dtype))
    wm_p = jnp.zeros((H_pad, O_pad), compute_dtype).at[:H, :O].set(
        params["wm"].astype(compute_dtype))
    b1_p = jnp.zeros((1, H_pad), jnp.float32).at[:, :H].set(
        (params["bx"] + params["bh"]).astype(jnp.float32))
    bm_p = jnp.zeros((1, O_pad), jnp.float32).at[:, :O].set(
        params["bm"].astype(jnp.float32))
    return dict(wx=wx_p, wh=wh_p, wm=wm_p, b1=b1_p, bm=bm_p, dims=(I, H, O))


def vanilla_rnn_cell(x_t, h_tm1, prepped, *, tb=256):
    """One RNN-cell step. Returns (y_t, h_t)."""
    B, I = x_t.shape
    H = h_tm1.shape[1]
    I_full, H_full, O = prepped["dims"]
    assert I == I_full and H == H_full
    dtype = x_t.dtype

    I_pad = prepped["wx"].shape[0]
    H_pad = prepped["wh"].shape[0]
    O_pad = prepped["wm"].shape[1]

    # MXU-sized batch tile (multiple of 16 for the bf16 operand cast), clamped
    # so tiny batches still run a single grid step.
    tb = max(16, min(_round_up(tb, 16), _round_up(B, 16)))
    B_pad = _round_up(B, tb)
    grid = (B_pad // tb,)

    # Per-call work is only the two activation pads (weights prepped at init).
    x_p = jnp.zeros((B_pad, I_pad), dtype).at[:B, :I].set(x_t)
    h_p = jnp.zeros((B_pad, H_pad), dtype).at[:B, :H].set(h_tm1)

    # Explicit VMEM budget: single-buffered weights + double-buffered
    # activation tiles, with headroom; capped at v7x's 64 MiB/TC.
    w_itemsize = prepped["wx"].dtype.itemsize
    a_itemsize = x_t.dtype.itemsize
    weight_bytes = ((I_pad * H_pad + H_pad * H_pad + H_pad * O_pad) * w_itemsize
                    + (H_pad + O_pad) * 4)
    act_tile_bytes = tb * (I_pad + 2 * H_pad + O_pad) * a_itemsize
    vmem_need = weight_bytes + 2 * act_tile_bytes
    vmem_limit = int(min(max(2 * vmem_need, 24 << 20), 64 << 20))

    cost = pl.CostEstimate(
        flops=2 * B_pad * (I_pad * H_pad + H_pad * H_pad + H_pad * O_pad),
        transcendentals=B_pad * H_pad,
        bytes_accessed=int(weight_bytes
                           + (x_p.size + h_p.size) * a_itemsize
                           + B_pad * (H_pad + O_pad) * a_itemsize),
    )

    # Grid-invariant operands: constant index_map + single buffer.
    wmode = pl.Buffered(1)

    y_p, h_out_p = pl.pallas_call(
        rnn_cell_kernel,
        out_shape=(
            jax.ShapeDtypeStruct((B_pad, O_pad), dtype),   # y_t (padded)
            jax.ShapeDtypeStruct((B_pad, H_pad), dtype),   # h_t (padded)
        ),
        grid_spec=pltpu.PrefetchScalarGridSpec(
            num_scalar_prefetch=0,
            grid=grid,
            in_specs=[
                # activations: tiled over batch (double-buffered by default)
                pl.BlockSpec((tb, I_pad), lambda b: (b, 0)),
                pl.BlockSpec((tb, H_pad), lambda b: (b, 0)),
                # weights / biases: VMEM-resident, single-buffered
                pl.BlockSpec((I_pad, H_pad), lambda b: (0, 0), pipeline_mode=wmode),
                pl.BlockSpec((H_pad, H_pad), lambda b: (0, 0), pipeline_mode=wmode),
                pl.BlockSpec((1, H_pad), lambda b: (0, 0), pipeline_mode=wmode),
                pl.BlockSpec((H_pad, O_pad), lambda b: (0, 0), pipeline_mode=wmode),
                pl.BlockSpec((1, O_pad), lambda b: (0, 0), pipeline_mode=wmode),
            ],
            out_specs=(
                pl.BlockSpec((tb, O_pad), lambda b: (b, 0)),
                pl.BlockSpec((tb, H_pad), lambda b: (b, 0)),
            ),
        ),
        compiler_params=pltpu.CompilerParams(
            dimension_semantics=("parallel",),
            vmem_limit_bytes=vmem_limit),
        cost_estimate=cost,
    )(x_p, h_p, prepped["wx"], prepped["wh"], prepped["b1"],
      prepped["wm"], prepped["bm"])

    # strip padding (also removes the tanh(b1) padded batch rows of h)
    return y_p[:B, :O], h_out_p[:B, :H]


def init_params(key, input_size, hidden_size, output_size, dtype=jnp.float32):
    """Deterministic init mirroring nn.Linear's U(-1/sqrt(fan_in), 1/sqrt(fan_in)).
    Weights stored (in_features, out_features) so the kernel does x @ W + b."""
    ks = jax.random.split(key, 6)

    def lin(kw, kb, fan_in, fan_out):
        bound = 1.0 / jnp.sqrt(fan_in)
        w = jax.random.uniform(kw, (fan_in, fan_out), dtype, -bound, bound)
        b = jax.random.uniform(kb, (1, fan_out), dtype, -bound, bound)
        return w, b

    wx, bx = lin(ks[0], ks[1], input_size, hidden_size)
    wh, bh = lin(ks[2], ks[3], hidden_size, hidden_size)
    wm, bm = lin(ks[4], ks[5], hidden_size, output_size)
    return dict(wx=wx, bx=bx, wh=wh, bh=bh, wm=wm, bm=bm)


def reference(x_t, h_tm1, p):
    h_t = jnp.tanh(x_t @ p["wx"] + p["bx"] + h_tm1 @ p["wh"] + p["bh"])
    y_t = h_t @ p["wm"] + p["bm"]
    return y_t, h_t


if __name__ == "__main__":
    key = jax.random.PRNGKey(0)
    k_x, k_h, k_p = jax.random.split(key, 3)

    batch, input_size, hidden_size, output_size = 2, 16, 32, 8

    x_t = jax.random.normal(k_x, (batch, input_size), jnp.float32)
    h_tm1 = jax.random.normal(k_h, (batch, hidden_size), jnp.float32)
    params = init_params(k_p, input_size, hidden_size, output_size)

    prepped = prepare_params(params)          # init-time weight prep (once)
    y_t, h_t = vanilla_rnn_cell(x_t, h_tm1, prepped)
    jax.block_until_ready((y_t, h_t))

    y_ref, h_ref = reference(x_t, h_tm1, params)   # f32 reference
    assert y_t.shape == (batch, output_size)
    assert h_t.shape == (batch, hidden_size)
    # bf16 matmul operands with f32 accumulation -> loosened tolerance.
    assert jnp.allclose(h_t, h_ref, atol=5e-2, rtol=5e-2), "h_t mismatch"
    assert jnp.allclose(y_t, y_ref, atol=5e-2, rtol=5e-2), "y_t mismatch"

    print("KERNEL_OK")
</pallas_src>

<mosaic_0001>
module attributes {stable_mosaic.version = 11 : i64} {
  func.func @rnn_cell_kernel(%arg0: i32, %arg1: memref<16x128xf32, #tpu.memory_space<vmem>>, %arg2: memref<16x128xf32, #tpu.memory_space<vmem>>, %arg3: memref<128x128xbf16, #tpu.memory_space<vmem>>, %arg4: memref<128x128xbf16, #tpu.memory_space<vmem>>, %arg5: memref<1x128xf32, #tpu.memory_space<vmem>>, %arg6: memref<128x128xbf16, #tpu.memory_space<vmem>>, %arg7: memref<1x128xf32, #tpu.memory_space<vmem>>, %arg8: memref<16x128xf32, #tpu.memory_space<vmem>>, %arg9: memref<16x128xf32, #tpu.memory_space<vmem>>) attributes {dimension_semantics = [#tpu.dimension_semantics<parallel>], iteration_bounds = array<i64: 1>, scalar_prefetch = 0 : i64, scratch_operands = 0 : i64, tpu.core_type = #tpu.core_type<tc>, window_params = [{transform_indices = @transform_0, window_bounds = array<i64: 16, 128>}, {transform_indices = @transform_1, window_bounds = array<i64: 16, 128>}, {pipeline_mode = #tpu.pipeline_mode<synchronous>, transform_indices = @transform_2, window_bounds = array<i64: 128, 128>}, {pipeline_mode = #tpu.pipeline_mode<synchronous>, transform_indices = @transform_3, window_bounds = array<i64: 128, 128>}, {pipeline_mode = #tpu.pipeline_mode<synchronous>, transform_indices = @transform_4, window_bounds = array<i64: 1, 128>}, {pipeline_mode = #tpu.pipeline_mode<synchronous>, transform_indices = @transform_5, window_bounds = array<i64: 128, 128>}, {pipeline_mode = #tpu.pipeline_mode<synchronous>, transform_indices = @transform_6, window_bounds = array<i64: 1, 128>}, {transform_indices = @transform_7, window_bounds = array<i64: 16, 128>}, {transform_indices = @transform_8, window_bounds = array<i64: 16, 128>}]} {
    %c0 = arith.constant 0 : index
    %c0_0 = arith.constant 0 : index
    %0 = vector.load %arg1[%c0, %c0_0] : memref<16x128xf32, #tpu.memory_space<vmem>>, vector<16x128xf32>
    %1 = arith.truncf %0 : vector<16x128xf32> to vector<16x128xbf16>
    %c0_1 = arith.constant 0 : index
    %c0_2 = arith.constant 0 : index
    %2 = vector.load %arg2[%c0_1, %c0_2] : memref<16x128xf32, #tpu.memory_space<vmem>>, vector<16x128xf32>
    %3 = arith.truncf %2 : vector<16x128xf32> to vector<16x128xbf16>
    %c0_3 = arith.constant 0 : index
    %c0_4 = arith.constant 0 : index
    %4 = vector.load %arg3[%c0_3, %c0_4] : memref<128x128xbf16, #tpu.memory_space<vmem>>, vector<128x128xbf16>
    %cst = arith.constant dense<0.000000e+00> : vector<16x128xf32>
    %5 = tpu.matmul %1, %4, %cst {dimension_numbers = #tpu.dot_dimension_numbers<[1], [0], [0], [1], [0, 0, 1, 1], [], []>} : vector<16x128xbf16>, vector<128x128xbf16>, vector<16x128xf32> -> vector<16x128xf32>
    %c0_5 = arith.constant 0 : index
    %c0_6 = arith.constant 0 : index
    %6 = vector.load %arg4[%c0_5, %c0_6] : memref<128x128xbf16, #tpu.memory_space<vmem>>, vector<128x128xbf16>
    %cst_7 = arith.constant dense<0.000000e+00> : vector<16x128xf32>
    %7 = tpu.matmul %3, %6, %cst_7 {dimension_numbers = #tpu.dot_dimension_numbers<[1], [0], [0], [1], [0, 0, 1, 1], [], []>} : vector<16x128xbf16>, vector<128x128xbf16>, vector<16x128xf32> -> vector<16x128xf32>
    %8 = arith.addf %5, %7 : vector<16x128xf32>
    %c0_8 = arith.constant 0 : index
    %c0_9 = arith.constant 0 : index
    %9 = vector.load %arg5[%c0_8, %c0_9] : memref<1x128xf32, #tpu.memory_space<vmem>>, vector<1x128xf32>
    %10 = vector.broadcast %9 : vector<1x128xf32> to vector<16x128xf32>
    %11 = arith.addf %8, %10 : vector<16x128xf32>
    %12 = math.tanh %11 : vector<16x128xf32>
    %c0_10 = arith.constant 0 : index
    %c0_11 = arith.constant 0 : index
    %13 = vector.load %arg9[%c0_10, %c0_11] : memref<16x128xf32, #tpu.memory_space<vmem>>, vector<16x128xf32>
    tpu.vector_store %arg9[%c0_10, %c0_11], %12 {strides = array<i32>} : memref<16x128xf32, #tpu.memory_space<vmem>>, vector<16x128xf32>,
    %14 = arith.truncf %12 : vector<16x128xf32> to vector<16x128xbf16>
    %c0_12 = arith.constant 0 : index
    %c0_13 = arith.constant 0 : index
    %15 = vector.load %arg6[%c0_12, %c0_13] : memref<128x128xbf16, #tpu.memory_space<vmem>>, vector<128x128xbf16>
    %cst_14 = arith.constant dense<0.000000e+00> : vector<16x128xf32>
    %16 = tpu.matmul %14, %15, %cst_14 {dimension_numbers = #tpu.dot_dimension_numbers<[1], [0], [0], [1], [0, 0, 1, 1], [], []>} : vector<16x128xbf16>, vector<128x128xbf16>, vector<16x128xf32> -> vector<16x128xf32>
    %c0_15 = arith.constant 0 : index
    %c0_16 = arith.constant 0 : index
    %17 = vector.load %arg7[%c0_15, %c0_16] : memref<1x128xf32, #tpu.memory_space<vmem>>, vector<1x128xf32>
    %18 = vector.broadcast %17 : vector<1x128xf32> to vector<16x128xf32>
    %19 = arith.addf %16, %18 : vector<16x128xf32>
    %c0_17 = arith.constant 0 : index
    %c0_18 = arith.constant 0 : index
    %20 = vector.load %arg8[%c0_17, %c0_18] : memref<16x128xf32, #tpu.memory_space<vmem>>, vector<16x128xf32>
    tpu.vector_store %arg8[%c0_17, %c0_18], %19 {strides = array<i32>} : memref<16x128xf32, #tpu.memory_space<vmem>>, vector<16x128xf32>,
    return
  }
  func.func @transform_0(%arg0: i32) -> (i32, i32) {
    %c0_i32 = arith.constant 0 : i32
    %c0_i32_0 = arith.constant 0 : i32
    return %arg0, %c0_i32 : i32, i32
  }
  func.func @transform_1(%arg0: i32) -> (i32, i32) {
    %c0_i32 = arith.constant 0 : i32
    %c0_i32_0 = arith.constant 0 : i32
    return %arg0, %c0_i32 : i32, i32
  }
  func.func @transform_2(%arg0: i32) -> (i32, i32) {
    %c0_i32 = arith.constant 0 : i32
    %c0_i32_0 = arith.constant 0 : i32
    %c0_i32_1 = arith.constant 0 : i32
    return %c0_i32, %c0_i32_0 : i32, i32
  }
  func.func @transform_3(%arg0: i32) -> (i32, i32) {
    %c0_i32 = arith.constant 0 : i32
    %c0_i32_0 = arith.constant 0 : i32
    %c0_i32_1 = arith.constant 0 : i32
    return %c0_i32, %c0_i32_0 : i32, i32
  }
  func.func @transform_4(%arg0: i32) -> (i32, i32) {
    %c0_i32 = arith.constant 0 : i32
    %c0_i32_0 = arith.constant 0 : i32
    %c0_i32_1 = arith.constant 0 : i32
    return %c0_i32, %c0_i32_0 : i32, i32
  }
  func.func @transform_5(%arg0: i32) -> (i32, i32) {
    %c0_i32 = arith.constant 0 : i32
    %c0_i32_0 = arith.constant 0 : i32
    %c0_i32_1 = arith.constant 0 : i32
    return %c0_i32, %c0_i32_0 : i32, i32
  }
  func.func @transform_6(%arg0: i32) -> (i32, i32) {
    %c0_i32 = arith.constant 0 : i32
    %c0_i32_0 = arith.constant 0 : i32
    %c0_i32_1 = arith.constant 0 : i32
    return %c0_i32, %c0_i32_0 : i32, i32
  }
  func.func @transform_7(%arg0: i32) -> (i32, i32) {
    %c0_i32 = arith.constant 0 : i32
    %c0_i32_0 = arith.constant 0 : i32
    return %arg0, %c0_i32 : i32, i32
  }
  func.func @transform_8(%arg0: i32) -> (i32, i32) {
    %c0_i32 = arith.constant 0 : i32
    %c0_i32_0 = arith.constant 0 : i32
    return %arg0, %c0_i32 : i32, i32
  }
}

</mosaic_0001>

<bundles_post_ra>
// kernel: tpu_custom_call.1
= control target key start
LH: loop header
LB: loop body
LE: loop exit
PB: predicated region body
PF: predicated region fallthrough
CT: control target
= control target key end

     0   :  { %14 = vsyncpa [#allocation3], 0  ;;  %s918_s0 = inlined_call_operand.hbm [shape: f32[16,128], index: 0, kind: input, shape index: {}]   ;;  %s919_s1 = inlined_call_operand.hbm [shape: f32[16,128], index: 1, kind: input, shape index: {}]   ;;  %s920_s2 = inlined_call_operand.hbm [shape: bf16[128,128], index: 2, kind: input, shape index: {}]   ;;  %s921_s3 = inlined_call_operand.hbm [shape: bf16[128,128], index: 3, kind: input, shape index: {}]   ;;  %s922_s4 = inlined_call_operand.vmem [shape: f32[1,128], index: 4, kind: input, shape index: {}]   ;;  %s923_s5 = inlined_call_operand.hbm [shape: bf16[128,128], index: 5, kind: input, shape index: {}]   ;;  %s924_s6 = inlined_call_operand.vmem [shape: f32[1,128], index: 6, kind: input, shape index: {}]   ;;  %s925_s7 = inlined_call_operand.hbm [shape: f32[16,128], index: 7, kind: output, shape index: {0}]   ;;  %s926_s8 = inlined_call_operand.hbm [shape: f32[16,128], index: 8, kind: output, shape index: {1}]  }
   0x1   :  { %15 = vsyncpa [#allocation6], 0 }
   0x2   :  { %16 = vsyncpa [#allocation9], 0 }
   0x3   :  { %17 = vsyncpa [#allocation4], 0 }
   0x4   :  { %18 = vsyncpa [#allocation13], 0  ;;  %s782_s27 = smov [#allocation5]  }
   0x5   :  { %s36_s28 = sshll.u32 %s782_s27, 4  ;;  %s37_s28 = int_to_ptr.vmem [resolvable:$true] %s36_s28 }
   0x6   :  { %s640_s29 = scalar_lea.vmem %s37_s28, 256  ;;  %p645_p1 = scmp.lt.s32.totalorder %s37_s28, %s37_s28 }
   0x7   :  { %p641_p0 = scmp.ne.s32.totalorder %s37_s28, %s640_s29  ;;  %p646_p2 = scmp.lt.s32.totalorder %s640_s29, %s640_s29 }
   0x9   :  { %p647_p3 = por %p646_p2, %p645_p1 }
   0xb   :  { %p648_p4 = pnand %p647_p3, %p641_p0 }
   0xd   :  { %651 = shalt.err (!%p648_p4)
}
   0xe   :  { %s783_s30 = smov 128   ;;  %s784_s9 = smov 8  }
   0xf   :  { %42 = dma.hbm_to_vmem [thread:$0]  %s919_s1, 256, %s37_s28, [#allocation6], %s783_s30, %s783_s30, %s784_s9  }
  0x10   :  { %s785_s12 = smov [#allocation8]   ;;  %s786_s14 = smov [#allocation2]  }
  0x11   :  { %s60_s13 = sshll.u32 %s785_s12, 4  ;;  %s24_s15 = sshll.u32 %s786_s14, 4  ;;  %s61_s13 = int_to_ptr.vmem [resolvable:$true] %s60_s13  ;;  %s25_s15 = int_to_ptr.vmem [resolvable:$true] %s24_s15 }
  0x12   :  { %s660_s16 = scalar_lea.vmem %s61_s13, 1024  ;;  %p665_p6 = scmp.lt.s32.totalorder %s61_s13, %s61_s13 }
  0x13   :  { %p661_p5 = scmp.ne.s32.totalorder %s61_s13, %s660_s16  ;;  %p666_p7 = scmp.lt.s32.totalorder %s660_s16, %s660_s16 }
  0x15   :  { %p667_p8 = por %p666_p7, %p665_p6 }
  0x17   :  { %p668_p9 = pnand %p667_p8, %p661_p5 }
  0x19   :  { %671 = shalt.err (!%p668_p9)
}
  0x1a   :  { %s787_s17 = smov 64   ;;  %s788_s18 = smov 4  }
  0x1b   :  { %66 = dma.hbm_to_vmem [thread:$0]  %s921_s3, 1024, %s61_s13, [#allocation9], %s787_s17, %s787_s17, %s788_s18  }
  0x1c   :  { %s680_s1 = scalar_lea.vmem %s25_s15, 256  ;;  %p685_p11 = scmp.lt.s32.totalorder %s25_s15, %s25_s15 }
  0x1d   :  { %p681_p10 = scmp.ne.s32.totalorder %s25_s15, %s680_s1  ;;  %p686_p12 = scmp.lt.s32.totalorder %s680_s1, %s680_s1 }
  0x1f   :  { %p687_p13 = por %p686_p12, %p685_p11 }
  0x21   :  { %p688_p0 = pnand %p687_p13, %p681_p10 }
  0x23   :  { %691 = shalt.err (!%p688_p0)
}
  0x24   :  { %30 = dma.hbm_to_vmem [thread:$0]  %s918_s0, 256, %s25_s15, [#allocation3], %s783_s30, %s783_s30, %s784_s9  }
  0x25   :  { %s789_s23 = smov [#allocation7]   ;;  %s790_s25 = smov [#allocation10]  }
  0x26   :  { %s48_s24 = sshll.u32 %s789_s23, 4  ;;  %s74_s3 = sshll.u32 %s790_s25, 4  ;;  %s49_s24 = int_to_ptr.vmem [resolvable:$true] %s48_s24  ;;  %s75_s3 = int_to_ptr.vmem [resolvable:$true] %s74_s3 }
  0x27   :  { %s700_s26 = scalar_lea.vmem %s49_s24, 1024  ;;  %p705_p2 = scmp.lt.s32.totalorder %s49_s24, %s49_s24 }
  0x28   :  { %p701_p1 = scmp.ne.s32.totalorder %s49_s24, %s700_s26  ;;  %p706_p3 = scmp.lt.s32.totalorder %s700_s26, %s700_s26 }
  0x2a   :  { %p707_p4 = por %p706_p3, %p705_p2 }
  0x2c   :  { %p708_p5 = pnand %p707_p4, %p701_p1 }
  0x2e   :  { %711 = shalt.err (!%p708_p5)
}
  0x2f   :  { %54 = dma.hbm_to_vmem [thread:$0]  %s920_s2, 1024, %s49_s24, [#allocation6], %s787_s17, %s787_s17, %s788_s18  }
  0x30   :  { %s720_s0 = scalar_lea.vmem %s75_s3, 1024  ;;  %p725_p7 = scmp.lt.s32.totalorder %s75_s3, %s75_s3 }
  0x31   :  { %p721_p6 = scmp.ne.s32.totalorder %s75_s3, %s720_s0  ;;  %p726_p8 = scmp.lt.s32.totalorder %s720_s0, %s720_s0 }
  0x33   :  { %p727_p9 = por %p726_p8, %p725_p7 }
  0x35   :  { %p728_p10 = pnand %p727_p9, %p721_p6 }
  0x37   :  { %731 = shalt.err (!%p728_p10)
}
  0x38   :  { %80 = dma.hbm_to_vmem [thread:$0]  %s923_s5, 1024, %s75_s3, [#allocation9], %s787_s17, %s787_s17, %s788_s18  }
  0x39   :  { %772 = dma.done.wait [#allocation3], 256  }
  0x3a   :  { %773 = vsyncadd [#allocation3], 4294967040 }
  0x3b   :  { %774 = dma.done.wait [#allocation6], 1280  }
  0x3c   :  { %775 = vsyncadd [#allocation6], 4294966016 }
  0x3d   :  { %776 = dma.done.wait [#allocation9], 2048  }
  0x3e   :  { %777 = vsyncadd [#allocation9], 4294965248  ;;  %v791_v0 = vmov 0.0   ;;  %vm792_vm0 = vmmov 0   ;;  %v604_v1 = vld [vmem:[#allocation8 + $0x38] sm:$0xff]   ;;  %v606_v3 = vld [vmem:[#allocation8 + $0x30] sm:$0xff]  }
  0x3f   :  { %531 = vmatprep.subr.bf16.mxu0 %v791_v0  ;;  %551 = vmatprep.subr.bf16.mxu1 %v791_v0  ;;  %v605_v2 = vld [vmem:[#allocation7 + $0x38] sm:$0xff]   ;;  %v607_v4 = vld [vmem:[#allocation7 + $0x30] sm:$0xff]   ;;  %v608_v5 = vld [vmem:[#allocation8 + $0x28] sm:$0xff]   ;;  %s793_s11 = smov [#allocation12]  }
  0x40   :  { %547 = vmatprep.mubr.msk.bf16.mxu0 %vm792_vm0, %v791_v0  ;;  %567 = vmatprep.mubr.msk.bf16.mxu1 %vm792_vm0, %v791_v0  ;;  %v609_v6 = vld [vmem:[#allocation7 + $0x28] sm:$0xff]   ;;  %v610_v7 = vld [vmem:[#allocation8 + $0x20] sm:$0xff]   ;;  %v612_v9 = vld [vmem:[#allocation8 + $0x18] sm:$0xff]  }
  0x41   :  { %532 = vmatpush3.bf16.msra.mxu0 %v604_v1  ;;  %552 = vmatpush3.bf16.msra.mxu1 %v605_v2  ;;  %v611_v8 = vld [vmem:[#allocation7 + $0x20] sm:$0xff]   ;;  %v613_v10 = vld [vmem:[#allocation7 + $0x18] sm:$0xff]   ;;  %v614_v11 = vld [vmem:[#allocation8 + $0x10] sm:$0xff]  }
  0x42   :  { %533 = vmatprep.subr.bf16.mxu0 %v791_v0  ;;  %553 = vmatprep.subr.bf16.mxu1 %v791_v0  ;;  %v615_v12 = vld [vmem:[#allocation7 + $0x10] sm:$0xff]   ;;  %v616_v13 = vld [vmem:[#allocation8 + $0x8] sm:$0xff]   ;;  %v618_v15 = vld [vmem:[#allocation8] sm:$0xff]  }
  0x43   :  { %v617_v14 = vld [vmem:[#allocation7 + $0x8] sm:$0xff]   ;;  %v102_v16 = vld [vmem:[#allocation5] sm:$0xff]  ;;  %v103_v17 = vld [vmem:[#allocation5 + $0x8] sm:$0xff] }
  0x44   :  { %v619_v18 = vld [vmem:[#allocation7] sm:$0xff]   ;;  %v100_v20 = vld [vmem:[#allocation2 + $0x8] sm:$0xff]  ;;  %v104_v21 = vpack.c.bf16 %v103_v17, %v102_v16  ;;  %v620_v23 = vld [vmem:[#allocation10 + $0x38] sm:$0xff]  }
  0x45   :  { %534 = vmatpush3.bf16.msra.mxu0 %v606_v3  ;;  %554 = vmatpush3.bf16.msra.mxu1 %v607_v4  ;;  %v99_v19 = vld [vmem:[#allocation2] sm:$0xff]  ;;  %v621_v24 = vld [vmem:[#allocation10 + $0x30] sm:$0xff]   ;;  %v622_v25 = vld [vmem:[#allocation10 + $0x28] sm:$0xff]  }
  0x46   :  { %535 = vmatprep.subr.bf16.mxu0 %v791_v0  ;;  %555 = vmatprep.subr.bf16.mxu1 %v791_v0  ;;  %v101_v22 = vpack.c.bf16 %v100_v20, %v99_v19  ;;  %v623_v26 = vld [vmem:[#allocation10 + $0x20] sm:$0xff]   ;;  %v624_v27 = vld [vmem:[#allocation10 + $0x18] sm:$0xff]   ;;  %v625_v28 = vld [vmem:[#allocation10 + $0x10] sm:$0xff]  }
  0x47   :  { %v626_v29 = vld [vmem:[#allocation10 + $0x8] sm:$0xff]   ;;  %v627_v30 = vld [vmem:[#allocation10] sm:$0xff]  }
  0x48   :  { %v494_v33 = vld [vmem:[%s922_s4] ss:$0 sm:$0xff]  ;;  %s460_s4 = sshll.u32 %s793_s11, 4  ;;  %s461_s4 = int_to_ptr.vmem [resolvable:$true] %s460_s4 }
  0x49   :  { %536 = vmatpush3.bf16.msra.mxu0 %v608_v5  ;;  %556 = vmatpush3.bf16.msra.mxu1 %v609_v6  ;;  %s732_s12 = scalar_lea.vmem %s461_s4, 256  ;;  %p737_p12 = scmp.lt.s32.totalorder %s461_s4, %s461_s4 }
  0x4a   :  { %537 = vmatprep.subr.bf16.mxu0 %v791_v0  ;;  %557 = vmatprep.subr.bf16.mxu1 %v791_v0  ;;  %p733_p11 = scmp.ne.s32.totalorder %s461_s4, %s732_s12  ;;  %p738_p13 = scmp.lt.s32.totalorder %s732_s12, %s732_s12 }
  0x4c   :  { %p739_p0 = por %p738_p13, %p737_p12 }
  0x4d   :  { %538 = vmatpush3.bf16.msra.mxu0 %v610_v7  ;;  %558 = vmatpush3.bf16.msra.mxu1 %v611_v8 }
  0x4e   :  { %539 = vmatprep.subr.bf16.mxu0 %v791_v0  ;;  %559 = vmatprep.subr.bf16.mxu1 %v791_v0  ;;  %p740_p1 = pnand %p739_p0, %p733_p11 }
  0x51   :  { %540 = vmatpush3.bf16.msra.mxu0 %v612_v9  ;;  %560 = vmatpush3.bf16.msra.mxu1 %v613_v10 }
  0x52   :  { %541 = vmatprep.subr.bf16.mxu0 %v791_v0  ;;  %561 = vmatprep.subr.bf16.mxu1 %v791_v0 }
  0x55   :  { %542 = vmatpush3.bf16.msra.mxu0 %v614_v11  ;;  %562 = vmatpush3.bf16.msra.mxu1 %v615_v12 }
  0x56   :  { %543 = vmatprep.subr.bf16.mxu0 %v791_v0  ;;  %563 = vmatprep.subr.bf16.mxu1 %v791_v0 }
  0x59   :  { %544 = vmatpush3.bf16.msra.mxu0 %v616_v13  ;;  %564 = vmatpush3.bf16.msra.mxu1 %v617_v14 }
  0x5a   :  { %545 = vmatprep.subr.bf16.mxu0 %v791_v0  ;;  %565 = vmatprep.subr.bf16.mxu1 %v791_v0 }
  0x5d   :  { %546 = vmatpush3.bf16.msra.mxu0 %v618_v15  ;;  %566 = vmatpush3.bf16.msra.mxu1 %v619_v18 }
  0x5e   :  { %571 = vmatprep.subr.bf16.mxu0 %v791_v0 }
  0x60   :  { %548 = vmatmul.mubr.bf16.vlgmr.msra.gmra.mxu0 %v104_v21  ;;  %568 = vmatmul.mubr.bf16.vlgmr.msra.gmra.mxu1 %v101_v22 }
  0x61   :  { %572 = vmatpush3.bf16.msra.mxu0 %v620_v23  ;;  %587 = vmatprep.mubr.msk.bf16.mxu0 %vm792_vm0, %v791_v0 }
  0x62   :  { %573 = vmatprep.subr.bf16.mxu0 %v791_v0 }
  0x65   :  { %574 = vmatpush3.bf16.msra.mxu0 %v621_v24 }
  0x66   :  { %575 = vmatprep.subr.bf16.mxu0 %v791_v0 }
  0x69   :  { %576 = vmatpush3.bf16.msra.mxu0 %v622_v25 }
  0x6a   :  { %577 = vmatprep.subr.bf16.mxu0 %v791_v0 }
  0x6d   :  { %578 = vmatpush3.bf16.msra.mxu0 %v623_v26 }
  0x6e   :  { %579 = vmatprep.subr.bf16.mxu0 %v791_v0 }
  0x71   :  { %580 = vmatpush3.bf16.msra.mxu0 %v624_v27 }
  0x72   :  { %581 = vmatprep.subr.bf16.mxu0 %v791_v0 }
  0x75   :  { %582 = vmatpush3.bf16.msra.mxu0 %v625_v28 }
  0x76   :  { %583 = vmatprep.subr.bf16.mxu0 %v791_v0 }
  0x79   :  { %584 = vmatpush3.bf16.msra.mxu0 %v626_v29 }
  0x7a   :  { %585 = vmatprep.subr.bf16.mxu0 %v791_v0 }
  0x7d   :  { %586 = vmatpush3.bf16.msra.mxu0 %v627_v30 }
 0x120   :  { %v219_v31 = vpop.f32.mrf.mxu0  ;;  %v308_v32 = vpop.f32.mrf.mxu1 }
 0x121   :  { %v309_v34 = vadd.f32 %v308_v32, %v219_v31 }
 0x122   :  { %v549_v35 = vpop.f32.mrf.mxu0  ;;  %v569_v36 = vpop.f32.mrf.mxu1 }
 0x123   :  { %v322_v37 = vadd.f32 %v494_v33, %v309_v34 }
 0x124   :  { %v222_v38 = vpop.f32.mrf.mxu0  ;;  %v311_v39 = vpop.f32.mrf.mxu1 }
 0x125   :  { %628 = vtanh.f32 %v322_v37  ;;  %v312_v40 = vadd.f32 %v311_v39, %v222_v38 }
 0x126   :  { %v550_v41 = vpop.f32.mrf.mxu0  ;;  %v570_v42 = vpop.f32.mrf.mxu1 }
 0x127   :  { %v323_v43 = vadd.f32 %v494_v33, %v312_v40 }
 0x129   :  { %630 = vtanh.f32 %v323_v43 }
 0x132   :  { %v629_v44 = vpop.eup %628 }
 0x133   :  { %326 = vst [vmem:[#allocation12] sm:$0xff] %v629_v44 }
 0x136   :  { %v631_v45 = vpop.eup %630 }
 0x137   :  { %327 = vst [vmem:[#allocation12 + $0x8] sm:$0xff] %v631_v45  ;;  %v328_v46 = vpack.c.bf16 %v631_v45, %v629_v44 }
 0x139   :  { %588 = vmatmul.mubr.bf16.vlgmr.msra.gmra.mxu0 %v328_v46 }
 0x13a   :  { %743 = shalt.err (!%p740_p1)
}
 0x13b   :  { %466 = dma.vmem_to_hbm [thread:$0]  %s461_s4, 256, %s926_s8, [#allocation13], %s783_s30, %s783_s30, %s784_s9  }
 0x13c   :  { %v495_v47 = vld [vmem:[%s924_s6] ss:$0 sm:$0xff]  ;;  %s794_s17 = smov [#allocation11]  }
 0x13d   :  { %s448_s18 = sshll.u32 %s794_s17, 4  ;;  %s449_s18 = int_to_ptr.vmem [resolvable:$true] %s448_s18 }
 0x13e   :  { %s752_s19 = scalar_lea.vmem %s449_s18, 256  ;;  %p757_p3 = scmp.lt.s32.totalorder %s449_s18, %s449_s18 }
 0x13f   :  { %p753_p2 = scmp.ne.s32.totalorder %s449_s18, %s752_s19  ;;  %p758_p4 = scmp.lt.s32.totalorder %s752_s19, %s752_s19 }
 0x141   :  { %p759_p5 = por %p758_p4, %p757_p3 }
 0x143   :  { %p760_p6 = pnand %p759_p5, %p753_p2 }
 0x1f9   :  { %v434_v48 = vpop.f32.mrf.mxu0 }
 0x1fa   :  { %v435_v49 = vadd.f32 %v495_v47, %v434_v48 }
 0x1fb   :  { %v589_v50 = vpop.f32.mrf.mxu0 }
 0x1fc   :  { %441 = vst [vmem:[#allocation11] sm:$0xff] %v435_v49 }
 0x1fd   :  { %v437_v51 = vpop.f32.mrf.mxu0 }
 0x1fe   :  { %v438_v52 = vadd.f32 %v495_v47, %v437_v51 }
 0x1ff   :  { %v590_v53 = vpop.f32.mrf.mxu0 }
 0x200   :  { %442 = vst [vmem:[#allocation11 + $0x8] sm:$0xff] %v438_v52 }
 0x201   :  { %763 = shalt.err (!%p760_p6)
}
 0x202   :  { %454 = dma.vmem_to_hbm [thread:$0]  %s449_s18, 256, %s925_s7, [#allocation4], %s783_s30, %s783_s30, %s784_s9  }
 0x203   :  { %778 = dma.done.wait [#allocation4], 256  }
 0x204   :  { %779 = vsyncadd [#allocation4], 4294967040 }
 0x205   :  { %780 = dma.done.wait [#allocation13], 256  }
 0x206   :  { %781 = vsyncadd [#allocation13], 4294967040 }
 0x207   :  { %473 = vsyncpa [#allocation3], 1 }
 0x208   :  { %474 = vsyncpa [#allocation6], 1 }
 0x209   :  { %475 = vsyncpa [#allocation9], 1 }
 0x20a   :  { %476 = vsyncpa [#allocation4], 1 }
 0x20b   :  { %477 = vsyncpa [#allocation13], 1 }

</bundles_post_ra>
